<compile_context>
chip_gen: v6e
topology: v6e:2x2x1
jax: 0.10.0
libtpu: 0.0.40
codegen_flags: <defaults>
</compile_context>

<pallas_src>
import functools

import jax
import jax.numpy as jnp
from jax import lax
from jax.experimental import pallas as pl
from jax.experimental.pallas import tpu as pltpu


# -----------------------------------------------------------------------------
# Generation-aware tiling / VMEM limits
# -----------------------------------------------------------------------------

def _vmem_capacity_bytes():
    try:
        info = pltpu.get_tpu_info()
        cap = getattr(info, "vmem_capacity_bytes", None)
        if cap:
            return int(cap)
    except Exception:
        pass
    return 64 * 1024 * 1024          # conservative (v7x-sized) fallback


_VMEM_CAP = _vmem_capacity_bytes()
# Never request the entire physical VMEM; leave headroom for Mosaic scratch.
_VMEM_LIMIT = int(min(_VMEM_CAP - 8 * 1024 * 1024, 96 * 1024 * 1024))
_BIG_VMEM = _VMEM_CAP >= 100 * 1024 * 1024     # v5e / v6e (128 MiB) vs v7x (64 MiB)

# Projection matmul tiles: weight panels dominate HBM traffic, so tn/tk are
# pushed as large as VMEM allows to cut redundant weight re-reads.
_TM = 512
_TN = 4096 if _BIG_VMEM else 2048
_TK = 1024
_LM_TN = 4096 if _BIG_VMEM else 2048           # lm_head vocab tile

_MM_PARAMS = pltpu.CompilerParams(
    dimension_semantics=("parallel", "parallel", "arbitrary"),
    vmem_limit_bytes=_VMEM_LIMIT,
)


def _pick_tile(dim, target, unit):
    """Largest tile <= target that divides `dim` (a multiple of `unit`)."""
    if dim <= target:
        return dim
    t = (target // unit) * unit
    while t >= unit:
        if dim % t == 0:
            return t
        t -= unit
    return dim


def _mm_grid(M, K, N):
    tm = _pick_tile(M, _TM, 8)
    tk = _pick_tile(K, _TK, 128)
    tn = _pick_tile(N, _TN, 128)
    return tm, tk, tn, (M // tm, N // tn, K // tk)


# -----------------------------------------------------------------------------
# Tiled matmul kernels (bf16 in, f32 accumulate, fused epilogues)
# -----------------------------------------------------------------------------

def _mm_bias_kernel(x_ref, w_ref, b_ref, o_ref, acc_ref):
    k = pl.program_id(2)

    @pl.when(k == 0)
    def _():
        acc_ref[...] = jnp.zeros_like(acc_ref)

    acc_ref[...] += jnp.dot(x_ref[...], w_ref[...],
                            preferred_element_type=jnp.float32)

    @pl.when(k == pl.num_programs(2) - 1)
    def _():
        o_ref[...] = (acc_ref[...] + b_ref[...]).astype(o_ref.dtype)


def _mm_bias_res_kernel(x_ref, w_ref, b_ref, r_ref, o_ref, acc_ref):
    k = pl.program_id(2)

    @pl.when(k == 0)
    def _():
        acc_ref[...] = jnp.zeros_like(acc_ref)

    acc_ref[...] += jnp.dot(x_ref[...], w_ref[...],
                            preferred_element_type=jnp.float32)

    @pl.when(k == pl.num_programs(2) - 1)
    def _():
        out = acc_ref[...] + b_ref[...] + r_ref[...].astype(jnp.float32)
        o_ref[...] = out.astype(o_ref.dtype)


def _mm_gegelu_kernel(x_ref, wg_ref, wl_ref, bg_ref, bl_ref, o_ref,
                      accg_ref, accl_ref, *, limit, isinf_guard):
    k = pl.program_id(2)

    @pl.when(k == 0)
    def _():
        accg_ref[...] = jnp.zeros_like(accg_ref)
        accl_ref[...] = jnp.zeros_like(accl_ref)

    x = x_ref[...]
    accg_ref[...] += jnp.dot(x, wg_ref[...], preferred_element_type=jnp.float32)
    accl_ref[...] += jnp.dot(x, wl_ref[...], preferred_element_type=jnp.float32)

    @pl.when(k == pl.num_programs(2) - 1)
    def _():
        g = accg_ref[...] + bg_ref[...]
        l = accl_ref[...] + bl_ref[...]
        if limit is not None:
            g_c = jnp.minimum(g, limit)                  # clamp(max=limit)
            l_c = jnp.clip(l, -limit, limit)             # clamp(-limit, limit)
            if isinf_guard:                              # matches torch.where(isinf,...)
                g_c = jnp.where(jnp.isinf(g), g, g_c)
                l_c = jnp.where(jnp.isinf(l), l, l_c)
            g, l = g_c, l_c
        out_gelu = g * jax.nn.sigmoid(1.702 * g)         # quick_gelu
        o_ref[...] = (out_gelu * (l + 1.0)).astype(o_ref.dtype)


def linear_bias(x, w, b):
    """x:(M,K) bf16, w:(K,N) bf16, b:(1,N) f32 -> (M,N) bf16."""
    M, K = x.shape
    N = w.shape[1]
    tm, tk, tn, grid = _mm_grid(M, K, N)
    return pl.pallas_call(
        _mm_bias_kernel,
        out_shape=jax.ShapeDtypeStruct((M, N), x.dtype),
        grid=grid,
        in_specs=[
            pl.BlockSpec((tm, tk), lambda i, j, k: (i, k)),
            pl.BlockSpec((tk, tn), lambda i, j, k: (k, j)),
            pl.BlockSpec((1, tn), lambda i, j, k: (0, j)),
        ],
        out_specs=pl.BlockSpec((tm, tn), lambda i, j, k: (i, j)),
        scratch_shapes=[pltpu.VMEM((tm, tn), jnp.float32)],
        compiler_params=_MM_PARAMS,
    )(x, w, b)


def linear_bias_residual(x, w, b, res):
    """(x @ w + b) + res, residual fused into the epilogue."""
    M, K = x.shape
    N = w.shape[1]
    tm, tk, tn, grid = _mm_grid(M, K, N)
    return pl.pallas_call(
        _mm_bias_res_kernel,
        out_shape=jax.ShapeDtypeStruct((M, N), res.dtype),
        grid=grid,
        in_specs=[
            pl.BlockSpec((tm, tk), lambda i, j, k: (i, k)),
            pl.BlockSpec((tk, tn), lambda i, j, k: (k, j)),
            pl.BlockSpec((1, tn), lambda i, j, k: (0, j)),
            pl.BlockSpec((tm, tn), lambda i, j, k: (i, j)),
        ],
        out_specs=pl.BlockSpec((tm, tn), lambda i, j, k: (i, j)),
        scratch_shapes=[pltpu.VMEM((tm, tn), jnp.float32)],
        compiler_params=_MM_PARAMS,
    )(x, w, b, res)


def linear_gegelu(x, w_gelu, w_lin, b_gelu, b_lin, limit, isinf_guard):
    """Fused up-proj + gegelu: gegelu(x @ [wg|wl] + [bg|bl]) -> (M, I)."""
    M, K = x.shape
    N = w_gelu.shape[1]
    tm, tk, tn, grid = _mm_grid(M, K, N)
    return pl.pallas_call(
        functools.partial(_mm_gegelu_kernel, limit=limit,
                          isinf_guard=isinf_guard),
        out_shape=jax.ShapeDtypeStruct((M, N), x.dtype),
        grid=grid,
        in_specs=[
            pl.BlockSpec((tm, tk), lambda i, j, k: (i, k)),
            pl.BlockSpec((tk, tn), lambda i, j, k: (k, j)),
            pl.BlockSpec((tk, tn), lambda i, j, k: (k, j)),
            pl.BlockSpec((1, tn), lambda i, j, k: (0, j)),
            pl.BlockSpec((1, tn), lambda i, j, k: (0, j)),
        ],
        out_specs=pl.BlockSpec((tm, tn), lambda i, j, k: (i, j)),
        scratch_shapes=[pltpu.VMEM((tm, tn), jnp.float32),
                        pltpu.VMEM((tm, tn), jnp.float32)],
        compiler_params=_MM_PARAMS,
    )(x, w_gelu, w_lin, b_gelu, b_lin)


# -----------------------------------------------------------------------------
# lm_head: full-K GEMV against the tied (V, D) embedding table (no transposed
# copy, no zero-bias), large vocab tiles, fused 1/mup_width_multiplier scale.
# -----------------------------------------------------------------------------

def _lm_head_kernel(x_ref, w_ref, o_ref, *, logit_scale):
    s = lax.dot_general(x_ref[...], w_ref[...], (((1,), (1,)), ((), ())),
                        preferred_element_type=jnp.float32)
    o_ref[...] = s * logit_scale


def lm_head_logits(x, embed, mup_width_multiplier):
    M, D = x.shape
    V = embed.shape[0]
    tn = _pick_tile(V, _LM_TN, 128)
    scale = (1.0 / mup_width_multiplier) if mup_width_multiplier else 1.0
    return pl.pallas_call(
        functools.partial(_lm_head_kernel, logit_scale=scale),
        out_shape=jax.ShapeDtypeStruct((M, V), jnp.float32),
        grid=(V // tn,),
        in_specs=[
            pl.BlockSpec((M, D), lambda j: (0, 0)),
            pl.BlockSpec((tn, D), lambda j: (j, 0)),
        ],
        out_specs=pl.BlockSpec((M, tn), lambda j: (0, j)),
        compiler_params=pltpu.CompilerParams(
            dimension_semantics=("parallel",),
            vmem_limit_bytes=_VMEM_LIMIT),
    )(x, embed)


# -----------------------------------------------------------------------------
# LayerNorm (tiled over tokens)
# -----------------------------------------------------------------------------

def _layernorm_kernel(x_ref, g_ref, b_ref, o_ref, *, eps):
    x = x_ref[...].astype(jnp.float32)
    mean = jnp.mean(x, axis=-1, keepdims=True)
    xc = x - mean
    var = jnp.mean(xc * xc, axis=-1, keepdims=True)
    out = xc * lax.rsqrt(var + eps) * g_ref[...] + b_ref[...]
    o_ref[...] = out.astype(o_ref.dtype)


def layernorm(x, gamma, beta, eps):
    # TODO(synk): could fuse LN into the consuming matmul prologue to save one
    # (T, D) HBM round trip per norm; kept standalone for simplicity.
    T, D = x.shape
    tq = _pick_tile(T, 256, 8)
    return pl.pallas_call(
        functools.partial(_layernorm_kernel, eps=eps),
        out_shape=jax.ShapeDtypeStruct((T, D), x.dtype),
        grid=(T // tq,),
        in_specs=[
            pl.BlockSpec((tq, D), lambda i: (i, 0)),
            pl.BlockSpec((1, D), lambda i: (0, 0)),
            pl.BlockSpec((1, D), lambda i: (0, 0)),
        ],
        out_specs=pl.BlockSpec((tq, D), lambda i: (i, 0)),
        compiler_params=pltpu.CompilerParams(
            dimension_semantics=("parallel",)),
    )(x, gamma, beta)


# -----------------------------------------------------------------------------
# RoPE tables.  sin table carries the rotate-half sign so the kernel can use a
# single pltpu.roll (XLU) instead of slice/concat:
#   rotate_half(x)*sin == roll(x, Dh/2) * [-sin | +sin]
# -----------------------------------------------------------------------------

def rope_tables(positions, head_dim, base, scaling_factor):
    half = head_dim // 2
    inv_freq = 1.0 / (base ** (jnp.arange(0, head_dim, 2, dtype=jnp.float32)
                               / head_dim))
    t = positions.astype(jnp.float32) / scaling_factor
    ang = t[:, None] * inv_freq[None, :]                       # (T, half)
    cos = jnp.concatenate([jnp.cos(ang), jnp.cos(ang)], axis=-1)
    s = jnp.sin(ang)
    sin_signed = jnp.concatenate([-s, s], axis=-1)
    return cos, sin_signed                                     # (T, Dh) f32


# -----------------------------------------------------------------------------
# Grouped causal attention: query-tiled flash attention with fused RoPE.
#   q: (T, Hkv, nq, Dh)   k/v: (Hkv, T, Dh)   cos/sin: (T, Dh)
# grid = (kv_group, q_tile, kv_tile); nq heads stacked (head-major rows) into a
# single MXU matmul per kv tile; causal-masked kv tiles are skipped.
# -----------------------------------------------------------------------------

def _attn_kernel(q_ref, k_ref, v_ref, cosq_ref, sinq_ref, cosk_ref, sink_ref,
                 o_ref, q_scr, m_scr, l_scr, acc_scr, *, scale):
    # TODO(synk): Phi3-Small blocksparse attention pattern (vert_stride /
    # local_blocks) is not reproduced; this computes dense causal attention,
    # which matches the dense-attention layers and short-sequence prefill.
    i = pl.program_id(1)
    j = pl.program_id(2)
    tq, _, nq, dh = q_ref.shape
    kvt = k_ref.shape[1]
    half = dh // 2

    @pl.when(j == 0)
    def _():
        # Stage the query tile once per (group, q-tile): RoPE + scale + stack
        # the group's heads head-major into (nq*tq, Dh) bf16.
        cos = cosq_ref[...]
        sin = sinq_ref[...]
        for h in range(nq):                                    # nq is tiny/static
            qh = q_ref[:, 0, h, :].astype(jnp.float32)         # (tq, Dh)
            qh = qh * cos + pltpu.roll(qh, shift=half, axis=1) * sin
            q_scr[h * tq:(h + 1) * tq, :] = (qh * scale).astype(q_scr.dtype)
        m_scr[...] = jnp.full_like(m_scr, -1e30)
        l_scr[...] = jnp.zeros_like(l_scr)
        acc_scr[...] = jnp.zeros_like(acc_scr)

    # Skip kv tiles entirely above the causal diagonal for this query tile.
    @pl.when(j * kvt <= i * tq + (tq - 1))
    def _():
        rows = tq * nq
        k = k_ref[0].astype(jnp.float32)                       # (kvt, Dh)
        k = k * cosk_ref[...] + pltpu.roll(k, shift=half, axis=1) * sink_ref[...]
        k = k.astype(jnp.bfloat16)
        v = v_ref[0]                                           # (kvt, Dh) bf16

        # One tall MXU matmul over the group's stacked heads (scale folded in q).
        s = lax.dot_general(q_scr[...], k, (((1,), (1,)), ((), ())),
                            preferred_element_type=jnp.float32)   # (rows, kvt)
        r_iota = lax.broadcasted_iota(jnp.int32, (rows, kvt), 0)
        row_tok = i * tq + (r_iota % tq)                       # row = h*tq + t
        col_tok = j * kvt + lax.broadcasted_iota(jnp.int32, (rows, kvt), 1)
        s = jnp.where(col_tok <= row_tok, s, -1e30)            # finite mask: no NaNs

        m_prev = m_scr[...]                                    # (rows, 128) replicated
        m_cur = jnp.max(s, axis=-1, keepdims=True)             # (rows, 1)
        m_new = jnp.maximum(m_prev, m_cur)                     # (rows, 128)
        m_new1 = m_new[:, :1]
        alpha1 = jnp.exp(m_prev[:, :1] - m_new1)               # (rows, 1)
        p = jnp.exp(s - m_new1)                                # (rows, kvt)
        l_scr[...] = alpha1 * l_scr[...] + jnp.sum(p, axis=-1, keepdims=True)
        acc_scr[...] = alpha1 * acc_scr[...] + jnp.dot(
            p.astype(jnp.bfloat16), v, preferred_element_type=jnp.float32)
        m_scr[...] = m_new

    @pl.when(j == pl.num_programs(2) - 1)
    def _():
        inv_l = pl.reciprocal(l_scr[:, :1], approx=True)       # (rows, 1)
        for h in range(nq):
            out = acc_scr[h * tq:(h + 1) * tq, :] * inv_l[h * tq:(h + 1) * tq, :]
            o_ref[:, 0, h, :] = out.astype(o_ref.dtype)


def attention(q, k, v, cos, sin, scale, tq_target=256, kv_target=512):
    T, Hkv, nq, Dh = q.shape
    tq = _pick_tile(T, tq_target, 8)
    kvt = _pick_tile(T, kv_target, 8)
    rows = tq * nq

    def kv_block(g, i, j):
        # Clamp fully-masked kv tiles to the last needed one: block index is
        # unchanged on skipped steps so their DMA is elided; compute is gated.
        jc = jnp.minimum(j, (i * tq + tq - 1) // kvt)
        return (g, jc, 0)

    def kv_cs_block(g, i, j):
        jc = jnp.minimum(j, (i * tq + tq - 1) // kvt)
        return (jc, 0)

    return pl.pallas_call(
        functools.partial(_attn_kernel, scale=scale),
        out_shape=jax.ShapeDtypeStruct((T, Hkv, nq, Dh), q.dtype),
        grid=(Hkv, T // tq, T // kvt),
        in_specs=[
            pl.BlockSpec((tq, 1, nq, Dh), lambda g, i, j: (i, g, 0, 0)),
            pl.BlockSpec((1, kvt, Dh), kv_block),
            pl.BlockSpec((1, kvt, Dh), kv_block),
            pl.BlockSpec((tq, Dh), lambda g, i, j: (i, 0)),
            pl.BlockSpec((tq, Dh), lambda g, i, j: (i, 0)),
            pl.BlockSpec((kvt, Dh), kv_cs_block),
            pl.BlockSpec((kvt, Dh), kv_cs_block),
        ],
        out_specs=pl.BlockSpec((tq, 1, nq, Dh), lambda g, i, j: (i, g, 0, 0)),
        scratch_shapes=[
            pltpu.VMEM((rows, Dh), jnp.bfloat16),   # roped, scaled, stacked q
            pltpu.VMEM((rows, 128), jnp.float32),   # running max (lane-replicated)
            pltpu.VMEM((rows, 128), jnp.float32),   # running denom
            pltpu.VMEM((rows, Dh), jnp.float32),    # output accumulator
        ],
        compiler_params=pltpu.CompilerParams(
            dimension_semantics=("parallel", "parallel", "arbitrary"),
            vmem_limit_bytes=_VMEM_LIMIT),
    )(q, k, v, cos, sin, cos, sin)


# -----------------------------------------------------------------------------
# Model
# -----------------------------------------------------------------------------

def decoder_layer(h, cos, sin, layer, cfg):
    D = cfg["hidden_size"]
    H = cfg["num_heads"]
    Hkv = cfg["num_kv_heads"]
    Dh = D // H
    nq = H // Hkv
    eps = cfg["layer_norm_epsilon"]
    T = h.shape[0]

    # ---- self attention block ----
    residual = h
    x = layernorm(h, layer["ln1_g"], layer["ln1_b"], eps)
    qkv = linear_bias(x, layer["qkv_w"], layer["qkv_b"])      # (T, (H+2Hkv)*Dh)
    # qkv columns are laid out [q(group,head,d) | k(group,d) | v(group,d)]
    # (weight column permutation done at init), so these are free reshapes.
    q = qkv[:, : H * Dh].reshape(T, Hkv, nq, Dh)
    k = qkv[:, H * Dh:(H + Hkv) * Dh].reshape(T, Hkv, Dh)
    v = qkv[:, (H + Hkv) * Dh:].reshape(T, Hkv, Dh)
    # Contiguous (Hkv, T, Dh) kv slabs -> full-burst DMA for every kv tile
    # (k/v are re-read T/tq times inside attention; one cheap XLA transpose).
    k = jnp.transpose(k, (1, 0, 2))
    v = jnp.transpose(v, (1, 0, 2))
    attn = attention(q, k, v, cos, sin, cfg["attn_scale"])    # (T, Hkv, nq, Dh)
    attn = attn.reshape(T, H * Dh)                            # free, lane-dense
    h = linear_bias_residual(attn, layer["o_w"], layer["o_b"], residual)

    # ---- MLP block ----
    residual = h
    x = layernorm(h, layer["ln2_g"], layer["ln2_b"], eps)
    mid = linear_gegelu(x, layer["upg_w"], layer["upl_w"],
                        layer["upg_b"], layer["upl_b"],
                        cfg["gegelu_limit"],
                        cfg.get("gegelu_isinf_guard", False))
    h = linear_bias_residual(mid, layer["down_w"], layer["down_b"], residual)
    return h


def phi3_small_forward(params, input_ids, positions, cfg):
    D = cfg["hidden_size"]
    Dh = D // cfg["num_heads"]

    # embedding gather (plain-JAX glue) + mup embedding multiplier
    h = params["embed"][input_ids]
    m = cfg["mup_embedding_multiplier"]
    if m is not None and m > 0.0:
        h = (h.astype(jnp.float32) * m).astype(jnp.bfloat16)

    cos, sin = rope_tables(positions, Dh, cfg["rope_embedding_base"],
                           cfg["rope_position_scale"])
    for layer in params["layers"]:
        h = decoder_layer(h, cos, sin, layer, cfg)
    h = layernorm(h, params["lnf_g"], params["lnf_b"],
                  cfg["layer_norm_epsilon"])

    # Last-token logits only (sglang LogitsProcessor contract); tied lm_head
    # contracts directly against the (V, D) embedding table (no duplicate copy)
    # and folds the 1/mup_width_multiplier logit scale into the kernel.
    # TODO(synk): dummy_token_indices -inf masking from compute_logits not replicated.
    h_last = h[-1:, :]
    return lm_head_logits(h_last, params["embed"], cfg["mup_width_multiplier"])


# -----------------------------------------------------------------------------
# Deterministic parameter init (bf16 weights, pre-transposed to (Din, Dout))
# -----------------------------------------------------------------------------

def init_params(key, cfg):
    D = cfg["hidden_size"]
    I = cfg["intermediate_size"]
    H = cfg["num_heads"]
    Hkv = cfg["num_kv_heads"]
    Dh = D // H
    V = cfg["vocab_size"]
    L = cfg["num_layers"]
    qkv_out = (H + 2 * Hkv) * Dh

    keys = iter(jax.random.split(key, 1 + 10 * L))

    def w(din, dout, scale=0.02):
        # NOTE: real checkpoints would be transposed to (Din, Dout), have the
        # qkv columns regrouped to [q|k|v], and the up_proj columns
        # de-interleaved (even->gelu, odd->linear) once at load time.
        return (scale * jax.random.normal(next(keys), (din, dout))
                ).astype(jnp.bfloat16)

    def b(dout, scale=0.02):
        return (scale * jax.random.normal(next(keys), (1, dout))
                ).astype(jnp.float32)

    embed = (0.02 * jax.random.normal(next(keys), (V, D))).astype(jnp.bfloat16)
    params = {
        "embed": embed,                 # (V, D): gather + tied lm_head
        "lnf_g": jnp.ones((1, D), jnp.float32),
        "lnf_b": jnp.zeros((1, D), jnp.float32),
        "layers": [],
    }
    for _ in range(L):
        params["layers"].append({
            "ln1_g": jnp.ones((1, D), jnp.float32),
            "ln1_b": jnp.zeros((1, D), jnp.float32),
            "qkv_w": w(D, qkv_out),
            "qkv_b": b(qkv_out),
            "o_w": w(D, D),
            "o_b": b(D),
            "ln2_g": jnp.ones((1, D), jnp.float32),
            "ln2_b": jnp.zeros((1, D), jnp.float32),
            "upg_w": w(D, I),           # gelu half of up_proj (de-interleaved)
            "upl_w": w(D, I),           # linear half of up_proj
            "upg_b": b(I),
            "upl_b": b(I),
            "down_w": w(I, D),
            "down_b": b(D),
        })
    return params


# -----------------------------------------------------------------------------
# Main
# -----------------------------------------------------------------------------

if __name__ == "__main__":
    head_dim = 128                      # real Phi3-small head_dim (lane-dense)
    num_heads = 4
    cfg = {
        "vocab_size": 512,
        "hidden_size": num_heads * head_dim,      # 512
        "intermediate_size": 1024,
        "num_heads": num_heads,
        "num_kv_heads": 2,
        "num_layers": 2,
        "layer_norm_epsilon": 1e-5,
        "gegelu_limit": 20.0,
        "gegelu_isinf_guard": False,    # identical for finite f32 activations
        "mup_embedding_multiplier": 10.0,
        "mup_width_multiplier": 8.0,
        # mup_use_scaling=True, mup_attn_multiplier=1.0 -> scale = 1/head_dim
        "attn_scale": 1.0 / (head_dim / 1.0),
        "rope_embedding_base": 10000.0,
        "rope_position_scale": 1.0,
    }

    key = jax.random.PRNGKey(0)
    pkey, ikey = jax.random.split(key)
    params = init_params(pkey, cfg)

    T = 8
    input_ids = jax.random.randint(ikey, (T,), 0, cfg["vocab_size"],
                                   dtype=jnp.int32)
    positions = jnp.arange(T, dtype=jnp.int32)

    logits = phi3_small_forward(params, input_ids, positions, cfg)
    logits = jax.block_until_ready(logits)

    assert logits.shape == (1, cfg["vocab_size"]), logits.shape
    assert logits.dtype == jnp.float32
    assert bool(jnp.all(jnp.isfinite(logits))), "non-finite logits"
    print("KERNEL_OK")
</pallas_src>

<mosaic_0001>
module attributes {stable_mosaic.version = 11 : i64} {
  func.func @_layernorm_kernel(%arg0: i32, %arg1: memref<8x512xbf16, #tpu.memory_space<vmem>>, %arg2: memref<1x512xf32, #tpu.memory_space<vmem>>, %arg3: memref<1x512xf32, #tpu.memory_space<vmem>>, %arg4: memref<8x512xbf16, #tpu.memory_space<vmem>>) attributes {dimension_semantics = [#tpu.dimension_semantics<parallel>], iteration_bounds = array<i64: 1>, scalar_prefetch = 0 : i64, scratch_operands = 0 : i64, tpu.core_type = #tpu.core_type<tc>, window_params = [{transform_indices = @transform_0, window_bounds = array<i64: 8, 512>}, {pipeline_mode = #tpu.pipeline_mode<synchronous>, transform_indices = @transform_1, window_bounds = array<i64: 1, 512>}, {pipeline_mode = #tpu.pipeline_mode<synchronous>, transform_indices = @transform_2, window_bounds = array<i64: 1, 512>}, {transform_indices = @transform_3, window_bounds = array<i64: 8, 512>}]} {
    %c0 = arith.constant 0 : index
    %c0_0 = arith.constant 0 : index
    %0 = vector.load %arg1[%c0, %c0_0] : memref<8x512xbf16, #tpu.memory_space<vmem>>, vector<8x512xbf16>
    %1 = arith.extf %0 : vector<8x512xbf16> to vector<8x512xf32>
    %cst = arith.constant dense<0.000000e+00> : vector<8xf32>
    %2 = vector.multi_reduction <add>, %1, %cst [1] : vector<8x512xf32> to vector<8xf32>
    %3 = vector.shape_cast %2 : vector<8xf32> to vector<8x1xf32>
    %cst_1 = arith.constant 5.120000e+02 : f32
    %4 = vector.broadcast %cst_1 : f32 to vector<8x1xf32>
    %5 = arith.divf %3, %4 : vector<8x1xf32>
    %6 = vector.broadcast %5 : vector<8x1xf32> to vector<8x512xf32>
    %7 = arith.subf %1, %6 : vector<8x512xf32>
    %8 = arith.mulf %7, %7 : vector<8x512xf32>
    %cst_2 = arith.constant dense<0.000000e+00> : vector<8xf32>
    %9 = vector.multi_reduction <add>, %8, %cst_2 [1] : vector<8x512xf32> to vector<8xf32>
    %10 = vector.shape_cast %9 : vector<8xf32> to vector<8x1xf32>
    %cst_3 = arith.constant 5.120000e+02 : f32
    %11 = vector.broadcast %cst_3 : f32 to vector<8x1xf32>
    %12 = arith.divf %10, %11 : vector<8x1xf32>
    %cst_4 = arith.constant 9.99999974E-6 : f32
    %13 = vector.broadcast %cst_4 : f32 to vector<8x1xf32>
    %14 = arith.addf %12, %13 : vector<8x1xf32>
    %15 = math.rsqrt %14 : vector<8x1xf32>
    %16 = vector.broadcast %15 : vector<8x1xf32> to vector<8x512xf32>
    %17 = arith.mulf %7, %16 : vector<8x512xf32>
    %c0_5 = arith.constant 0 : index
    %c0_6 = arith.constant 0 : index
    %18 = vector.load %arg2[%c0_5, %c0_6] : memref<1x512xf32, #tpu.memory_space<vmem>>, vector<1x512xf32>
    %19 = vector.broadcast %18 : vector<1x512xf32> to vector<8x512xf32>
    %20 = arith.mulf %17, %19 : vector<8x512xf32>
    %c0_7 = arith.constant 0 : index
    %c0_8 = arith.constant 0 : index
    %21 = vector.load %arg3[%c0_7, %c0_8] : memref<1x512xf32, #tpu.memory_space<vmem>>, vector<1x512xf32>
    %22 = vector.broadcast %21 : vector<1x512xf32> to vector<8x512xf32>
    %23 = arith.addf %20, %22 : vector<8x512xf32>
    %24 = arith.truncf %23 : vector<8x512xf32> to vector<8x512xbf16>
    %c0_9 = arith.constant 0 : index
    %c0_10 = arith.constant 0 : index
    %25 = vector.load %arg4[%c0_9, %c0_10] : memref<8x512xbf16, #tpu.memory_space<vmem>>, vector<8x512xbf16>
    tpu.vector_store %arg4[%c0_9, %c0_10], %24 {strides = array<i32>} : memref<8x512xbf16, #tpu.memory_space<vmem>>, vector<8x512xbf16>,
    return
  }
  func.func @transform_0(%arg0: i32) -> (i32, i32) {
    %c0_i32 = arith.constant 0 : i32
    %c0_i32_0 = arith.constant 0 : i32
    return %arg0, %c0_i32 : i32, i32
  }
  func.func @transform_1(%arg0: i32) -> (i32, i32) {
    %c0_i32 = arith.constant 0 : i32
    %c0_i32_0 = arith.constant 0 : i32
    %c0_i32_1 = arith.constant 0 : i32
    return %c0_i32, %c0_i32_0 : i32, i32
  }
  func.func @transform_2(%arg0: i32) -> (i32, i32) {
    %c0_i32 = arith.constant 0 : i32
    %c0_i32_0 = arith.constant 0 : i32
    %c0_i32_1 = arith.constant 0 : i32
    return %c0_i32, %c0_i32_0 : i32, i32
  }
  func.func @transform_3(%arg0: i32) -> (i32, i32) {
    %c0_i32 = arith.constant 0 : i32
    %c0_i32_0 = arith.constant 0 : i32
    return %arg0, %c0_i32 : i32, i32
  }
}

</mosaic_0001>

<bundles_post_ra>
// kernel: tpu_custom_call.1
= control target key start
LH: loop header
LB: loop body
LE: loop exit
PB: predicated region body
PF: predicated region fallthrough
CT: control target
= control target key end

     0   :  { %8 = vsyncpa [#allocation3], 0  ;;  %s301_s0 = inlined_call_operand.hbm [shape: bf16[8,512], index: 0, kind: input, shape index: {}]   ;;  %s302_s1 = inlined_call_operand.hbm [shape: f32[1,512], index: 1, kind: input, shape index: {}]   ;;  %s303_s2 = inlined_call_operand.hbm [shape: f32[1,512], index: 2, kind: input, shape index: {}]   ;;  %s304_s3 = inlined_call_operand.hbm [shape: bf16[8,512], index: 3, kind: output, shape index: {}]  }
   0x1   :  { %9 = vsyncpa [#allocation6], 0 }
   0x2   :  { %10 = vsyncpa [#allocation4], 0  ;;  %s265_s12 = smov [#allocation5]   ;;  %s266_s14 = smov [#allocation2]  }
   0x3   :  { %s27_s13 = sshll.u32 %s265_s12, 4  ;;  %s17_s15 = sshll.u32 %s266_s14, 4  ;;  %s28_s13 = int_to_ptr.vmem [resolvable:$true] %s27_s13  ;;  %s18_s15 = int_to_ptr.vmem [resolvable:$true] %s17_s15 }
   0x4   :  { %s187_s16 = scalar_lea.vmem %s28_s13, 64  ;;  %p192_p1 = scmp.lt.s32.totalorder %s28_s13, %s28_s13 }
   0x5   :  { %p188_p0 = scmp.ne.s32.totalorder %s28_s13, %s187_s16  ;;  %p193_p2 = scmp.lt.s32.totalorder %s187_s16, %s187_s16 }
   0x7   :  { %p194_p3 = por %p193_p2, %p192_p1 }
   0x9   :  { %p195_p4 = pnand %p194_p3, %p188_p0 }
   0xb   :  { %198 = shalt.err (!%p195_p4)
}
   0xc   :  { %30 = dma.hbm_to_vmem [thread:$0]  %s302_s1, 64, %s28_s13, [#allocation6]  }
   0xd   :  { %s207_s19 = scalar_lea.vmem %s18_s15, 256  ;;  %p212_p6 = scmp.lt.s32.totalorder %s18_s15, %s18_s15 }
   0xe   :  { %p208_p5 = scmp.ne.s32.totalorder %s18_s15, %s207_s19  ;;  %p213_p7 = scmp.lt.s32.totalorder %s207_s19, %s207_s19 }
  0x10   :  { %p214_p8 = por %p213_p7, %p212_p6 }
  0x12   :  { %p215_p9 = pnand %p214_p8, %p208_p5 }
  0x14   :  { %218 = shalt.err (!%p215_p9)
}
  0x15   :  { %20 = dma.hbm_to_vmem [thread:$0]  %s301_s0, 256, %s18_s15, [#allocation3]  }
  0x16   :  { %s267_s22 = smov [#allocation7]  }
  0x17   :  { %s37_s23 = sshll.u32 %s267_s22, 4  ;;  %s38_s23 = int_to_ptr.vmem [resolvable:$true] %s37_s23 }
  0x18   :  { %s227_s24 = scalar_lea.vmem %s38_s23, 64  ;;  %p232_p11 = scmp.lt.s32.totalorder %s38_s23, %s38_s23 }
  0x19   :  { %p228_p10 = scmp.ne.s32.totalorder %s38_s23, %s227_s24  ;;  %p233_p12 = scmp.lt.s32.totalorder %s227_s24, %s227_s24 }
  0x1b   :  { %p234_p13 = por %p233_p12, %p232_p11 }
  0x1d   :  { %p235_p0 = pnand %p234_p13, %p228_p10 }
  0x1f   :  { %238 = shalt.err (!%p235_p0)
}
  0x20   :  { %40 = dma.hbm_to_vmem [thread:$0]  %s303_s2, 64, %s38_s23, [#allocation6]  }
  0x21   :  { %259 = dma.done.wait [#allocation3], 256  }
  0x22   :  { %260 = vsyncadd [#allocation3], 4294967040 }
  0x23   :  { %261 = dma.done.wait [#allocation6], 128  }
  0x24   :  { %262 = vsyncadd [#allocation6], 4294967168  ;;  %v50_v0 = vld [vmem:[#allocation2] sm:$0xff]  ;;  %v51_v1 = vld [vmem:[#allocation2 + $0x8] sm:$0xff]  ;;  %v85_v25 = vlaneseq  ;;  %s268_s0 = smov [#allocation8]  }
  0x25   :  { %v52_v2 = vunpack.c.l.bf16 %v50_v0  ;;  %v53_v3 = vunpack.c.h.bf16 %v50_v0  ;;  %v54_v4 = vunpack.c.l.bf16 %v51_v1  ;;  %v55_v5 = vunpack.c.h.bf16 %v51_v1  ;;  %v83_v31 = vld [vmem:[#allocation5] sm:$0xf]  ;;  %v109_v32 = vld [vmem:[#allocation7] sm:$0xf]  ;;  %s159_s2 = sshll.u32 %s268_s0, 4  ;;  %s160_s2 = int_to_ptr.vmem [resolvable:$true] %s159_s2 }
  0x26   :  { %v86_v26 = vshrl.u32 %v85_v25, 7  ;;  %s239_s26 = scalar_lea.vmem %s160_s2, 256  ;;  %p244_p2 = scmp.lt.s32.totalorder %s160_s2, %s160_s2 }
  0x27   :  { %v56_v6 = vadd.f32 %v53_v3, %v52_v2  ;;  %p240_p1 = scmp.ne.s32.totalorder %s160_s2, %s239_s26  ;;  %p245_p3 = scmp.lt.s32.totalorder %s239_s26, %s239_s26 }
  0x28   :  { %v87_v27 = vsub.s32 0, %v86_v26  ;;  %v91_v28 = vsub.s32 1, %v86_v26  ;;  %v95_v29 = vsub.s32 2, %v86_v26  ;;  %v99_v30 = vsub.s32 3, %v86_v26 }
  0x29   :  { %v57_v7 = vadd.f32 %v56_v6, %v54_v4  ;;  %p246_p4 = por %p245_p3, %p244_p2 }
  0x2a   :  { %v88_v33 = vrot.slane %v83_v31, %v87_v27  ;;  %v92_v34 = vrot.slane %v83_v31, %v91_v28  ;;  %v96_v35 = vrot.slane %v83_v31, %v95_v29  ;;  %v100_v36 = vrot.slane %v83_v31, %v99_v30 }
  0x2b   :  { %v58_v8 = vadd.f32 %v57_v7, %v55_v5  ;;  %v114_v38 = vrot.slane %v109_v32, %v87_v27  ;;  %v118_v39 = vrot.slane %v109_v32, %v91_v28  ;;  %v122_v40 = vrot.slane %v109_v32, %v95_v29  ;;  %p247_p5 = pnand %p246_p4, %p240_p1 }
  0x2c   :  { %v126_v41 = vrot.slane %v109_v32, %v99_v30 }
  0x2d   :  { %59 = vadd.xlane.f32.xlu0 %v58_v8 }
  0xb6   :  { %v60_v9 = vpop.xlane.xlu0 %59 }
  0xb7   :  { %v62_v10 = vmul.f32 0.001953125, %v60_v9 }
  0xb9   :  { %v63_v11 = vsub.f32 %v52_v2, %v62_v10  ;;  %v64_v12 = vsub.f32 %v53_v3, %v62_v10  ;;  %v65_v13 = vsub.f32 %v54_v4, %v62_v10  ;;  %v66_v14 = vsub.f32 %v55_v5, %v62_v10 }
  0xbb   :  { %v67_v15 = vmul.f32 %v63_v11, %v63_v11  ;;  %v68_v16 = vmul.f32 %v64_v12, %v64_v12  ;;  %v69_v17 = vmul.f32 %v65_v13, %v65_v13  ;;  %v70_v19 = vmul.f32 %v66_v14, %v66_v14 }
  0xbd   :  { %v71_v18 = vadd.f32 %v68_v16, %v67_v15 }
  0xbf   :  { %v72_v20 = vadd.f32 %v71_v18, %v69_v17 }
  0xc1   :  { %v73_v21 = vadd.f32 %v72_v20, %v70_v19 }
  0xc3   :  { %74 = vadd.xlane.f32.xlu0 %v73_v21 }
 0x14c   :  { %v75_v22 = vpop.xlane.xlu0 %74 }
 0x14d   :  { %v76_v23 = vmul.f32 0.001953125, %v75_v22 }
 0x14f   :  { %v77_v24 = vadd.f32 1e-05, %v76_v23 }
 0x151   :  { %177 = vrsqrt.f32 %v77_v24 }
 0x15e   :  { %v178_v37 = vpop.eup %177 }
 0x15f   :  { %v79_v42 = vmul.f32 %v178_v37, %v63_v11  ;;  %v80_v43 = vmul.f32 %v178_v37, %v64_v12  ;;  %v81_v44 = vmul.f32 %v178_v37, %v65_v13  ;;  %v82_v45 = vmul.f32 %v178_v37, %v66_v14 }
 0x161   :  { %v105_v46 = vmul.f32 %v88_v33, %v79_v42  ;;  %v106_v47 = vmul.f32 %v92_v34, %v80_v43  ;;  %v107_v48 = vmul.f32 %v96_v35, %v81_v44  ;;  %v108_v49 = vmul.f32 %v100_v36, %v82_v45 }
 0x163   :  { %v131_v50 = vadd.f32 %v114_v38, %v105_v46  ;;  %v132_v51 = vadd.f32 %v118_v39, %v106_v47  ;;  %v133_v52 = vadd.f32 %v122_v40, %v107_v48  ;;  %v134_v53 = vadd.f32 %v126_v41, %v108_v49 }
 0x165   :  { %v171_v54 = vpack.c.bf16 %v132_v51, %v131_v50  ;;  %v172_v55 = vpack.c.bf16 %v134_v53, %v133_v52 }
 0x167   :  { %151 = vst [vmem:[#allocation8] sm:$0xff] %v171_v54  ;;  %152 = vst [vmem:[#allocation8 + $0x8] sm:$0xff] %v172_v55 }
 0x168   :  { %250 = shalt.err (!%p247_p5)
}
 0x169   :  { %162 = dma.vmem_to_hbm [thread:$0]  %s160_s2, 256, %s304_s3, [#allocation4]  }
 0x16a   :  { %263 = dma.done.wait [#allocation4], 256  }
 0x16b   :  { %264 = vsyncadd [#allocation4], 4294967040 }
 0x16c   :  { %166 = vsyncpa [#allocation3], 1 }
 0x16d   :  { %167 = vsyncpa [#allocation6], 1 }
 0x16e   :  { %168 = vsyncpa [#allocation4], 1 }

</bundles_post_ra>
